<compile_context>
chip_gen: v6e
topology: v6e:2x2x1
jax: 0.10.0
libtpu: 0.0.40
codegen_flags: <defaults>
</compile_context>

<pallas_src>
import functools

import numpy as np
import jax
import jax.numpy as jnp
from jax.experimental import pallas as pl
from jax.experimental.pallas import tpu as pltpu


def cosine_beta_schedule_discrete(timesteps, s=0.008):
    """Cosine schedule (numpy, identical to the PyTorch reference)."""
    steps = timesteps + 2
    x = np.linspace(0, steps, steps)
    alphas_cumprod = np.cos(0.5 * np.pi * (x / steps + s) / (1 + s)) ** 2
    alphas_cumprod = alphas_cumprod / alphas_cumprod[0]
    alphas = alphas_cumprod[1:] / alphas_cumprod[:-1]
    betas = 1 - alphas
    return betas.squeeze()


def _fused_lookup_kernel(params_ref, t_ref, tables_ref, beta_ref, abar_ref):
    """Fused gather: beta_ref = betas[round(t*scale)], abar_ref = alphas_bar[...].

    params_ref: SMEM (2,)       f32   [scale, t_max]
    t_ref:      VMEM (Bpad, 1)  f32
    tables_ref: VMEM (2, Lpad)  f32   row 0 = betas, row 1 = alphas_bar (lane-padded)
    beta_ref:   VMEM (Bpad, 1)  f32
    abar_ref:   VMEM (Bpad, 1)  f32
    """
    scale = params_ref[0]
    t_max = params_ref[1]

    t = t_ref[...]                                          # (Bpad, 1)
    t_scaled = jnp.clip(t * scale, 0.0, t_max)              # clamp to [0, timesteps]
    t_int = jnp.round(t_scaled).astype(jnp.int32)           # half-to-even, like torch

    bpad = t_ref.shape[0]
    lpad = tables_ref.shape[1]
    lane_ids = jax.lax.broadcasted_iota(jnp.int32, (bpad, lpad), 1)
    mask = lane_ids == t_int                                # (Bpad, Lpad) one-hot rows

    zero = jnp.float32(0.0)
    beta_sel = jnp.where(mask, tables_ref[0:1, :], zero)    # broadcast (1,Lpad)->(B,Lpad)
    abar_sel = jnp.where(mask, tables_ref[1:2, :], zero)

    beta_ref[...] = jnp.sum(beta_sel, axis=1, keepdims=True)   # (Bpad, 1)
    abar_ref[...] = jnp.sum(abar_sel, axis=1, keepdims=True)   # (Bpad, 1)


@functools.lru_cache(maxsize=None)
def _build_fused_lookup(bpad, lpad):
    """One compiled kernel per (batch bucket, padded table length)."""
    return pl.pallas_call(
        _fused_lookup_kernel,
        out_shape=(
            jax.ShapeDtypeStruct((bpad, 1), jnp.float32),
            jax.ShapeDtypeStruct((bpad, 1), jnp.float32),
        ),
        # grid=() : whole-array kernel, no pipeline scaffolding.
        in_specs=[
            pl.BlockSpec(memory_space=pltpu.MemorySpace.SMEM),   # params (2,)
            pl.BlockSpec(memory_space=pltpu.MemorySpace.VMEM),   # t      (Bpad, 1)
            pl.BlockSpec(memory_space=pltpu.MemorySpace.VMEM),   # tables (2, Lpad)
        ],
        out_specs=(
            pl.BlockSpec(memory_space=pltpu.MemorySpace.VMEM),
            pl.BlockSpec(memory_space=pltpu.MemorySpace.VMEM),
        ),
    )


def _bucket_batch(b):
    """Pad batch to a small set of fixed buckets to avoid per-size recompiles."""
    if b <= 8:
        return 8
    if b <= 1024:
        return 1 << (b - 1).bit_length()          # next power of two
    return ((b + 1023) // 1024) * 1024


class NoiseScheduleDiscrete:
    """JAX/Pallas port of the PyTorch NoiseScheduleDiscrete module."""

    def __init__(self, timesteps):
        self.timesteps = timesteps

        betas64 = np.asarray(cosine_beta_schedule_discrete(timesteps), dtype=np.float64)
        betas32 = betas64.astype(np.float32)
        self.betas = jnp.asarray(betas32)

        # alphas = 1 - clamp(betas, 0, 1), computed in float32 like the torch ref.
        alphas32 = (np.float32(1.0)
                    - np.clip(betas32, 0.0, 1.0).astype(np.float32)).astype(np.float32)
        self.alphas = jnp.asarray(alphas32)

        with np.errstate(divide="ignore"):
            log_alpha = np.log(alphas32).astype(np.float32)
        log_alpha_bar = np.cumsum(log_alpha, dtype=np.float32)
        alphas_bar32 = np.exp(log_alpha_bar).astype(np.float32)
        self.alphas_bar = jnp.asarray(alphas_bar32)

        # Stacked, lane-padded lookup tables: row 0 = betas, row 1 = alphas_bar.
        L = betas32.shape[0]                       # == timesteps + 1
        lpad = max(128, ((L + 127) // 128) * 128)
        tables = np.zeros((2, lpad), dtype=np.float32)
        tables[0, :L] = betas32
        tables[1, :L] = alphas_bar32
        self._tables = jnp.asarray(tables)
        self._lpad = lpad

    # ---- fused lookup ----------------------------------------------------
    def _fused_lookup(self, t_normalized=None, t_int=None):
        assert int(t_normalized is None) + int(t_int is None) == 1
        if t_int is None:
            t = jnp.asarray(t_normalized, jnp.float32)
            scale = float(self.timesteps)
        else:
            t = jnp.asarray(t_int, jnp.float32)
            scale = 1.0

        orig_shape = t.shape
        t2 = t.reshape(-1, 1)
        b = t2.shape[0]
        bpad = _bucket_batch(b)
        if bpad != b:
            t2 = jnp.pad(t2, ((0, bpad - b), (0, 0)))

        params = jnp.asarray([scale, float(self.timesteps)], dtype=jnp.float32)
        fn = _build_fused_lookup(bpad, self._lpad)
        beta, abar = fn(params, t2, self._tables)
        beta = beta[:b].reshape(orig_shape)
        abar = abar[:b].reshape(orig_shape)
        return beta, abar

    # ---- public API (mirrors the torch module) ---------------------------
    def forward(self, t_normalized=None, t_int=None):
        beta, _ = self._fused_lookup(t_normalized=t_normalized, t_int=t_int)
        return beta

    def __call__(self, t_normalized=None, t_int=None):
        return self.forward(t_normalized=t_normalized, t_int=t_int)

    def get_alpha_bar(self, t_normalized=None, t_int=None):
        _, abar = self._fused_lookup(t_normalized=t_normalized, t_int=t_int)
        return abar

    def get_beta_and_alpha_bar(self, t_normalized=None, t_int=None):
        """Both schedules from a single fused kernel dispatch."""
        return self._fused_lookup(t_normalized=t_normalized, t_int=t_int)


if __name__ == "__main__":
    timesteps = 500
    batch = 8

    sched = NoiseScheduleDiscrete(timesteps)

    key = jax.random.PRNGKey(0)
    # graph_dit feeds t_normalized of shape (batch, 1) in [0, 1].
    t_normalized = jax.random.uniform(key, (batch, 1), dtype=jnp.float32)

    # Fused path: one kernel call returns both schedules.
    beta, abar = sched.get_beta_and_alpha_bar(t_normalized=t_normalized)
    beta = jax.block_until_ready(beta)
    abar = jax.block_until_ready(abar)

    # Reference (numpy) gather to verify correctness.
    betas_np = np.asarray(sched.betas)
    abar_np = np.asarray(sched.alphas_bar)
    t_np = np.asarray(t_normalized)
    idx = np.round(t_np.astype(np.float32) * np.float32(timesteps)).astype(np.int64)
    ref_beta = betas_np[idx[..., 0]][..., None]
    ref_abar = abar_np[idx[..., 0]][..., None]
    np.testing.assert_allclose(np.asarray(beta), ref_beta, rtol=1e-6, atol=1e-7)
    np.testing.assert_allclose(np.asarray(abar), ref_abar, rtol=1e-6, atol=1e-7)

    # Separate API entry points reuse the same compiled kernel.
    out = jax.block_until_ready(sched.forward(t_normalized=t_normalized))
    np.testing.assert_allclose(np.asarray(out), ref_beta, rtol=1e-6, atol=1e-7)
    ab = jax.block_until_ready(sched.get_alpha_bar(t_normalized=t_normalized))
    np.testing.assert_allclose(np.asarray(ab), ref_abar, rtol=1e-6, atol=1e-7)

    # Integer-time path (scale=1.0 via the SMEM params, same kernel binary).
    t_int = jnp.asarray([[0], [1], [timesteps // 2], [timesteps]], dtype=jnp.int32)
    out_int = jax.block_until_ready(sched.forward(t_int=t_int))
    ref_int = betas_np[np.asarray(t_int)[..., 0]][..., None]
    np.testing.assert_allclose(np.asarray(out_int), ref_int, rtol=1e-6, atol=1e-7)

    # Batch-bucket check: a different (small) batch size maps to the same bucket.
    t_small = t_normalized[:3]
    out_small = jax.block_until_ready(sched.forward(t_normalized=t_small))
    np.testing.assert_allclose(np.asarray(out_small), ref_beta[:3], rtol=1e-6, atol=1e-7)

    print("KERNEL_OK")
</pallas_src>

<mosaic_0001>
module attributes {stable_mosaic.version = 11 : i64} {
  func.func @_fused_lookup_kernel(%arg0: memref<2xf32, #tpu.memory_space<smem>>, %arg1: memref<8x1xf32, #tpu.memory_space<vmem>>, %arg2: memref<2x512xf32, #tpu.memory_space<vmem>>, %arg3: memref<8x1xf32, #tpu.memory_space<vmem>>, %arg4: memref<8x1xf32, #tpu.memory_space<vmem>>) attributes {dimension_semantics = [], scalar_prefetch = 0 : i64, scratch_operands = 0 : i64, tpu.core_type = #tpu.core_type<tc>} {
    %c0 = arith.constant 0 : index
    %0 = memref.load %arg0[%c0] : memref<2xf32, #tpu.memory_space<smem>>
    %c1 = arith.constant 1 : index
    %1 = memref.load %arg0[%c1] : memref<2xf32, #tpu.memory_space<smem>>
    %c0_0 = arith.constant 0 : index
    %c0_1 = arith.constant 0 : index
    %2 = vector.load %arg1[%c0_0, %c0_1] : memref<8x1xf32, #tpu.memory_space<vmem>>, vector<8x1xf32>
    %3 = vector.broadcast %0 : f32 to vector<8x1xf32>
    %4 = arith.mulf %2, %3 : vector<8x1xf32>
    %cst = arith.constant 0.000000e+00 : f32
    %5 = vector.broadcast %cst : f32 to vector<8x1xf32>
    %6 = arith.maximumf %5, %4 : vector<8x1xf32>
    %7 = vector.broadcast %1 : f32 to vector<8x1xf32>
    %8 = arith.minimumf %7, %6 : vector<8x1xf32>
    %9 = math.roundeven %8 : vector<8x1xf32>
    %10 = arith.fptosi %9 : vector<8x1xf32> to vector<8x1xi32>
    %11 = tpu.iota {dimensions = array<i32: 1>} : vector<8x512xi32>
    %12 = vector.broadcast %10 : vector<8x1xi32> to vector<8x512xi32>
    %13 = arith.cmpi eq, %11, %12 : vector<8x512xi32>
    %c0_2 = arith.constant 0 : index
    %c0_3 = arith.constant 0 : index
    %14 = vector.load %arg2[%c0_2, %c0_3] : memref<2x512xf32, #tpu.memory_space<vmem>>, vector<1x512xf32>
    %cst_4 = arith.constant 0.000000e+00 : f32
    %15 = vector.shape_cast %14 : vector<1x512xf32> to vector<1x512xf32>
    %16 = vector.broadcast %15 : vector<1x512xf32> to vector<8x512xf32>
    %17 = vector.broadcast %cst_4 : f32 to vector<8x512xf32>
    %18 = arith.select %13, %16, %17 : vector<8x512xi1>, vector<8x512xf32>
    %c1_5 = arith.constant 1 : index
    %c0_6 = arith.constant 0 : index
    %19 = vector.load %arg2[%c1_5, %c0_6] : memref<2x512xf32, #tpu.memory_space<vmem>>, vector<1x512xf32>
    %cst_7 = arith.constant 0.000000e+00 : f32
    %20 = vector.shape_cast %19 : vector<1x512xf32> to vector<1x512xf32>
    %21 = vector.broadcast %20 : vector<1x512xf32> to vector<8x512xf32>
    %22 = vector.broadcast %cst_7 : f32 to vector<8x512xf32>
    %23 = arith.select %13, %21, %22 : vector<8x512xi1>, vector<8x512xf32>
    %cst_8 = arith.constant dense<0.000000e+00> : vector<8xf32>
    %24 = vector.multi_reduction <add>, %18, %cst_8 [1] : vector<8x512xf32> to vector<8xf32>
    %25 = vector.shape_cast %24 : vector<8xf32> to vector<8x1xf32>
    %c0_9 = arith.constant 0 : index
    %c0_10 = arith.constant 0 : index
    %26 = vector.load %arg3[%c0_9, %c0_10] : memref<8x1xf32, #tpu.memory_space<vmem>>, vector<8x1xf32>
    tpu.vector_store %arg3[%c0_9, %c0_10], %25 {strides = array<i32>} : memref<8x1xf32, #tpu.memory_space<vmem>>, vector<8x1xf32>,
    %cst_11 = arith.constant dense<0.000000e+00> : vector<8xf32>
    %27 = vector.multi_reduction <add>, %23, %cst_11 [1] : vector<8x512xf32> to vector<8xf32>
    %28 = vector.shape_cast %27 : vector<8xf32> to vector<8x1xf32>
    %c0_12 = arith.constant 0 : index
    %c0_13 = arith.constant 0 : index
    %29 = vector.load %arg4[%c0_12, %c0_13] : memref<8x1xf32, #tpu.memory_space<vmem>>, vector<8x1xf32>
    tpu.vector_store %arg4[%c0_12, %c0_13], %28 {strides = array<i32>} : memref<8x1xf32, #tpu.memory_space<vmem>>, vector<8x1xf32>,
    return
  }
}

</mosaic_0001>

<bundles_post_ra>
// kernel: tpu_custom_call.1
= control target key start
LH: loop header
LB: loop body
LE: loop exit
PB: predicated region body
PF: predicated region fallthrough
CT: control target
= control target key end

     0   :  { %10 = vsyncpa [#allocation3], 0  ;;  %s192_s0 = inlined_call_operand.vmem [shape: f32[2], index: 0, kind: input, shape index: {}]   ;;  %s193_s1 = inlined_call_operand.vmem [shape: f32[8,1], index: 1, kind: input, shape index: {}]   ;;  %s194_s2 = inlined_call_operand.vmem [shape: f32[2,512], index: 2, kind: input, shape index: {}]   ;;  %s195_s3 = inlined_call_operand.vmem [shape: f32[8,1], index: 3, kind: output, shape index: {0}]   ;;  %s196_s4 = inlined_call_operand.vmem [shape: f32[8,1], index: 4, kind: output, shape index: {1}]  }
   0x1   :  { %s17_s17 = sshll.u32 %s192_s0, 4  ;;  %s18_s17 = int_to_ptr.vmem [resolvable:$true] %s17_s17 }
   0x2   :  { %s133_s18 = scalar_lea.vmem %s18_s17, 16  ;;  %p138_p1 = scmp.lt.s32.totalorder %s18_s17, %s18_s17 }
   0x3   :  { %p134_p0 = scmp.ne.s32.totalorder %s18_s17, %s133_s18  ;;  %p139_p2 = scmp.lt.s32.totalorder %s133_s18, %s133_s18 }
   0x5   :  { %p140_p3 = por %p139_p2, %p138_p1 }
   0x7   :  { %p141_p4 = pnand %p140_p3, %p134_p0 }
   0x9   :  { %144 = shalt.err (!%p141_p4)
}
   0xa   :  { %s147_s19 = smov [#allocation2]  }
   0xb   :  { %20 = dma.vmem_to_smem %s18_s17, 16, %s147_s19, [#allocation3]  }
   0xc   :  { %145 = dma.done.wait [#allocation3], 16  }
   0xd   :  { %146 = vsyncadd [#allocation3], 4294967280 }
   0xe   :  { %28 = sfence }
   0xf   :  { %s29_s20 = sld [smem:[#allocation2]]  ;;  %v148_v0 = vmov 0   ;;  %v31_v1 = vld [vmem:[%s193_s1] sm:$0xff]  ;;  %v38_v8 = vlaneseq  ;;  %vm108_vm4 = vcmask 7168  }
  0x10   :  { %132 = vset.pattern.permute.xlu0 %v148_v0  ;;  %s125_s21 = sld [smem:[#allocation2 + $0x1]]  ;;  %v126_v13 = vld [vmem:[%s194_s2 + $0x1] ss:$2 sm:$0xf] }
  0x11   :  { %v53_v9 = vshrl.u32 %v38_v8, 7  ;;  %v39_v10 = vand.u32 127, %v38_v8  ;;  %v50_v15 = vld [vmem:[%s194_s2] ss:$2 sm:$0xf] }
  0x13   :  { %v54_v11 = vsub.s32 0, %v53_v9  ;;  %v58_v12 = vsub.s32 1, %v53_v9  ;;  %v62_v14 = vsub.s32 2, %v53_v9  ;;  %v40_v16 = vadd.s32 128, %v39_v10 }
  0x14   :  { %v41_v17 = vadd.s32 256, %v39_v10  ;;  %v66_v18 = vsub.s32 3, %v53_v9  ;;  %v42_v21 = vadd.s32 384, %v39_v10 }
  0x15   :  { %v32_v2 = vstv %s29_s20  ;;  %v82_v19 = vrot.slane %v126_v13, %v54_v11  ;;  %v86_v20 = vrot.slane %v126_v13, %v58_v12  ;;  %v55_v22 = vrot.slane %v50_v15, %v54_v11 }
  0x16   :  { %v33_v3 = vmul.f32 %v32_v2, %v31_v1  ;;  %v35_v4 = vstv %s125_s21  ;;  %v59_v23 = vrot.slane %v50_v15, %v58_v12  ;;  %v90_v25 = vrot.slane %v126_v13, %v62_v14 }
  0x17   :  { %v63_v26 = vrot.slane %v50_v15, %v62_v14  ;;  %v94_v27 = vrot.slane %v126_v13, %v66_v18  ;;  %v67_v30 = vrot.slane %v50_v15, %v66_v18 }
  0x18   :  { %v34_v5 = vmax.f32 %v33_v3, 0.0 }
  0x1a   :  { %v36_v6 = vmin.f32 %v35_v4, %v34_v5 }
  0x1c   :  { %v129_v7 = vcvt.f32.s32 %v36_v6 }
  0x1e   :  { %44 = vperm.xlu0 %132, %v129_v7  }
  0x99   :  { %v45_v24 = vpop.permute.xlu0 %44 }
  0x9a   :  { %vm46_vm0 = vcmp.eq.s32.totalorder %v39_v10, %v45_v24  ;;  %vm47_vm1 = vcmp.eq.s32.totalorder %v40_v16, %v45_v24  ;;  %vm48_vm2 = vcmp.eq.s32.totalorder %v41_v17, %v45_v24  ;;  %vm49_vm3 = vcmp.eq.s32.totalorder %v42_v21, %v45_v24 }
  0x9b   :  { %v99_v28 = vsel %vm46_vm0, %v82_v19, 0.0  ;;  %v100_v29 = vsel %vm47_vm1, %v86_v20, 0.0  ;;  %v72_v32 = vsel %vm46_vm0, %v55_v22, 0.0  ;;  %v73_v33 = vsel %vm47_vm1, %v59_v23, 0.0 }
  0x9c   :  { %v110_v31 = vadd.f32 %v100_v29, %v99_v28  ;;  %v101_v34 = vsel %vm48_vm2, %v90_v25, 0.0  ;;  %v103_v35 = vadd.f32 %v73_v33, %v72_v32  ;;  %v74_v37 = vsel %vm48_vm2, %v63_v26, 0.0 }
  0x9d   :  { %v102_v38 = vsel %vm49_vm3, %v94_v27, 0.0  ;;  %v75_v41 = vsel %vm49_vm3, %v67_v30, 0.0 }
  0x9e   :  { %v111_v36 = vadd.f32 %v110_v31, %v101_v34  ;;  %v104_v39 = vadd.f32 %v103_v35, %v74_v37 }
  0xa0   :  { %v112_v40 = vadd.f32 %v111_v36, %v102_v38  ;;  %v105_v42 = vadd.f32 %v104_v39, %v75_v41 }
  0xa2   :  { %113 = vadd.xlane.f32.xlu1 %v112_v40  ;;  %106 = vadd.xlane.f32.xlu0 %v105_v42 }
 0x12b   :  { %v114_v43 = vpop.xlane.xlu1 %113  ;;  %v107_v44 = vpop.xlane.xlu0 %106 }
 0x12c   :  { %115 = vst.msk [vmem:[%s196_s4] sm:$0xff] %vm108_vm4, %v114_v43  ;;  %109 = vst.msk [vmem:[%s195_s3] sm:$0xff] %vm108_vm4, %v107_v44 }
 0x12d   :  { %124 = vsyncpa [#allocation3], 1 }

</bundles_post_ra>
